<compile_context>
chip_gen: v7x
topology: tpu7x:2x2x1
jax: 0.10.0
libtpu: 0.0.40
codegen_flags: <defaults>
</compile_context>

<pallas_src>
import math

import jax
import jax.numpy as jnp
from jax.experimental import pallas as pl
from jax.experimental.pallas import tpu as pltpu

X_DIM = 3
H_DIM = 32
MSG_DIM = 2
BELIEF_DIM = 2
NEG_SLOPE = 0.01  # nn.LeakyReLU default

# --- lane-dense weight-slab column offsets ([H, 320] f32) --------------------
C_IN = 0            # lin_in                        (x_pad @ .)
C_ENC = 32          # encoder                       (h_msg @ .)
C_NN1_UA = 64       # [N_node.L1 | U h_node-half]   (h_node0 @ ., 64 wide, fused)
C_NN2 = 128         # N_node.L2                     (a1 @ .)
C_N1A = 160         # N.L1 aggr_msgs-half           (aggr_msgs @ .)
C_N2 = 192          # N.L2                          (b1 @ .)
C_UB = 224          # U aggr_out-half               (aggr_out @ .)
C_N1B_Z = 256       # [N.L1 encoded-half | 0]       (bottom block of fused edge dot)
W_COLS = 320

# bias-slab row indices ([7, H] f32)
B_IN, B_ENC, B_NN1, B_NN2, B_N1, B_N2, B_U = range(7)


def _leaky_relu(x):
    return jnp.where(x >= 0, x, NEG_SLOPE * x)


def mpnn_kernel(x_ref, h_msg_ref, src_oh_ref, dst_oh_t_ref, w_ref, b_ref,
                h_msg_out_ref, h_node_out_ref):
    """Fused lin_in / encoder / message / scatter / update in one kernel."""

    def fdot(a, b):
        return jnp.dot(a, b, preferred_element_type=jnp.float32)

    def w(c0, width=H_DIM):          # static column slice of the weight slab
        return w_ref[:, c0:c0 + width]

    def bias(k):                     # [1, H] static row slice of the bias slab
        return b_ref[k:k + 1, :]

    x = x_ref[...]                   # [N, H]  (x zero-padded to H cols)
    h_msg = h_msg_ref[...]           # [E, H]
    src_oh = src_oh_ref[...]         # [E, N]  one-hot of edge_index[0] (source j)
    dst_oh_t = dst_oh_t_ref[...]     # [N, E]  one-hot^T of edge_index[1] (target i)

    # h_node = lin_in(data.x); encoded_msg = encoder(h_msg)
    h_node0 = fdot(x, w(C_IN)) + bias(B_IN)                        # [N, H]
    encoded = fdot(h_msg, w(C_ENC)) + bias(B_ENC)                  # [E, H]

    # aggr_msgs = scatter_sum(encoded_msg, edge_index[1])
    aggr_msgs = fdot(dst_oh_t, encoded)                            # [N, H]

    # --- node-level work hoisted above the per-edge gather (E >= N) ---
    # shared-LHS fusion: h_node0 @ [W_NN1 | W_UA] in one 64-wide dot
    node1 = fdot(h_node0, w(C_NN1_UA, 2 * H_DIM))                  # [N, 64]
    a1 = _leaky_relu(node1[:, :H_DIM] + bias(B_NN1))               # N_node layer 1
    u_a = node1[:, H_DIM:]                                         # h_node0 @ W_UA
    a_node = _leaky_relu(fdot(a1, w(C_NN2)) + bias(B_NN2))         # N_node(h_node) [N,H]
    p_node = fdot(aggr_msgs, w(C_N1A))                             # aggr_msgs @ W_N1a [N,H]

    # --- edge-level: one fused gather dot ---
    # [src_oh | encoded] @ [[p_node | a_node], [W_N1b | 0]] -> [E, 64]
    #   cols  0:32 = src_oh@p_node + encoded@W_N1b   (N layer-1 pre-activation)
    #   cols 32:64 = src_oh@a_node                   (N_node(h_node_j))
    lhs_e = jnp.concatenate([src_oh, encoded], axis=1)             # [E, N+H]
    rhs_e = jnp.concatenate(
        [jnp.concatenate([p_node, a_node], axis=1),                # [N, 64]
         w(C_N1B_Z, 2 * H_DIM)],                                   # [H, 64] = [W_N1b | 0]
        axis=0)                                                    # [N+H, 64]
    edge = fdot(lhs_e, rhs_e)                                      # [E, 64]
    b1 = _leaky_relu(edge[:, :H_DIM] + bias(B_N1))
    b2 = _leaky_relu(fdot(b1, w(C_N2)) + bias(B_N2))               # [E, H]
    msg = edge[:, H_DIM:] + b2                                     # [E, H] -> new h_msg

    # aggregate 'add' over incoming edges (target i = edge_index[1])
    aggr_out = fdot(dst_oh_t, msg)                                 # [N, H]

    # update(): U(cat([h_node, aggr_out])) = h_node0@W_UA + aggr_out@W_UB + bU
    h_node_new = _leaky_relu(u_a + fdot(aggr_out, w(C_UB)) + bias(B_U))

    # TODO(synk): at real E (>=128 rows) emit these outputs lane-dense as
    # [H, E]/[H, N] and transpose in the wrapper (v5e single-vst-slot path).
    h_msg_out_ref[...] = msg
    h_node_out_ref[...] = h_node_new


def _linear_params(key, fan_in, fan_out):
    """PyTorch-style nn.Linear init: U(-1/sqrt(fan_in), 1/sqrt(fan_in))."""
    kw, kb = jax.random.split(key)
    bound = 1.0 / math.sqrt(fan_in)
    w = jax.random.uniform(kw, (fan_in, fan_out), jnp.float32, -bound, bound)
    b = jax.random.uniform(kb, (1, fan_out), jnp.float32, -bound, bound)
    return w, b


def init_params(key):
    ks = jax.random.split(key, 9)
    w_in, b_in = _linear_params(ks[0], X_DIM, H_DIM)
    w_enc, b_enc = _linear_params(ks[1], H_DIM, H_DIM)
    # N_node: Linear(h,h) -> LeakyReLU -> Linear(h,h) -> LeakyReLU
    w_nn1, b_nn1 = _linear_params(ks[2], H_DIM, H_DIM)
    w_nn2, b_nn2 = _linear_params(ks[3], H_DIM, H_DIM)
    # N: Linear(2h,h) -> LeakyReLU -> Linear(h,h) -> LeakyReLU  (concat weight split)
    w_n1_full, b_n1 = _linear_params(ks[4], 2 * H_DIM, H_DIM)
    w_n1a, w_n1b = w_n1_full[:H_DIM], w_n1_full[H_DIM:]
    w_n2, b_n2 = _linear_params(ks[5], H_DIM, H_DIM)
    # U: Linear(2h,h) -> LeakyReLU  (concat weight split)
    w_u_full, b_u = _linear_params(ks[6], 2 * H_DIM, H_DIM)
    w_ua, w_ub = w_u_full[:H_DIM], w_u_full[H_DIM:]
    # decoders (run in the XLA wrapper; 2-wide heads)
    wd, bd = _linear_params(ks[7], H_DIM, MSG_DIM)
    wb, bb = _linear_params(ks[8], H_DIM, BELIEF_DIM)

    # lane-dense 2D weight slab [H, 320] f32 — one contiguous DMA; fused
    # multi-head weights are static contiguous column slices.
    w_in_pad = jnp.pad(w_in, ((0, H_DIM - X_DIM), (0, 0)))   # lin_in folded into slab
    zero = jnp.zeros((H_DIM, H_DIM), jnp.float32)
    w_slab = jnp.concatenate(
        [w_in_pad, w_enc,      # C_IN, C_ENC
         w_nn1, w_ua,          # C_NN1_UA (shared-LHS fused pair for h_node0)
         w_nn2,                # C_NN2
         w_n1a,                # C_N1A
         w_n2,                 # C_N2
         w_ub,                 # C_UB
         w_n1b, zero],         # C_N1B_Z ([W_N1b | 0] block of the fused edge dot)
        axis=1).astype(jnp.float32)                          # [32, 320]
    b_slab = jnp.concatenate([b_in, b_enc, b_nn1, b_nn2, b_n1, b_n2, b_u],
                             axis=0).astype(jnp.float32)     # [7, 32]

    return {"w_slab": w_slab, "b_slab": b_slab,
            "wd": wd, "bd": bd, "wb": wb, "bb": bb}


@jax.jit
def mpnn_sender_aggr_loop(x, edge_index, h_msg, params):
    """Returns (h_msg_new, y_msg, y_beliefs_all, variable_mask)."""
    n_nodes = x.shape[0]
    n_edges = h_msg.shape[0]

    # pad x to H columns so lin_in lives in the weight slab (extra cols are zero)
    x_pad = jnp.pad(x.astype(jnp.float32), ((0, 0), (0, H_DIM - x.shape[1])))
    node_ids = jnp.arange(n_nodes, dtype=edge_index.dtype)
    # one-hots built directly in their consumed orientation (no XLA transpose)
    src_oh = (edge_index[0][:, None] == node_ids[None, :]).astype(jnp.float32)    # [E, N]
    dst_oh_t = (node_ids[:, None] == edge_index[1][None, :]).astype(jnp.float32)  # [N, E]

    vmem = pl.BlockSpec(memory_space=pltpu.MemorySpace.VMEM)
    inputs = (x_pad, h_msg.astype(jnp.float32), src_oh, dst_oh_t,
              params["w_slab"], params["b_slab"])

    # TODO(synk): at real graph sizes replace the dense one-hot gather/scatter
    # with scalar-prefetched edge indices (PrefetchScalarGridSpec + pl.Element
    # row gather, dst-sorted edge-tile reduction axis), add an edge-tile
    # "parallel" grid axis (v7x has 2 TensorCores) and set vmem_limit_bytes for
    # v7x's 64 MiB VMEM; at this toy size one grid point has the lowest overhead.
    h_msg_new, h_node_new = pl.pallas_call(
        mpnn_kernel,
        out_shape=(
            jax.ShapeDtypeStruct((n_edges, H_DIM), jnp.float32),
            jax.ShapeDtypeStruct((n_nodes, H_DIM), jnp.float32),
        ),
        in_specs=[vmem] * len(inputs),
        out_specs=(vmem, vmem),
        input_output_aliases={1: 0},   # h_msg buffer reused for h_msg_new
    )(*inputs)

    # 2-wide decoder heads + softmax stay in XLA (avoids masked partial stores
    # for last-dim-2 outputs inside the kernel).
    y_msg = jax.nn.softmax(h_msg_new @ params["wd"] + params["bd"], axis=-1)
    y_beliefs = jax.nn.softmax(h_node_new @ params["wb"] + params["bb"], axis=-1)

    # TODO(synk): PyTorch's BeliefsDecoderLayer returns dynamically-shaped
    # h_node[x[:,0]==1]; JAX needs static shapes, so beliefs for all nodes plus
    # the mask are returned (y_beliefs_all[mask] == PyTorch output).
    mask = x[:, 0] == 1
    return h_msg_new, y_msg, y_beliefs, mask


def _reference(x, edge_index, h_msg, params):
    """Plain-JAX forward (index gather + segment_sum scatter) for validation."""
    w, b = params["w_slab"], params["b_slab"]
    n_nodes = x.shape[0]
    src, dst = edge_index[0], edge_index[1]
    x_pad = jnp.pad(x, ((0, 0), (0, H_DIM - x.shape[1])))
    h_node0 = x_pad @ w[:, C_IN:C_IN + H_DIM] + b[B_IN]
    encoded = h_msg @ w[:, C_ENC:C_ENC + H_DIM] + b[B_ENC]
    aggr_msgs = jax.ops.segment_sum(encoded, dst, num_segments=n_nodes)
    a1 = _leaky_relu(h_node0 @ w[:, C_NN1_UA:C_NN1_UA + H_DIM] + b[B_NN1])
    a_node = _leaky_relu(a1 @ w[:, C_NN2:C_NN2 + H_DIM] + b[B_NN2])
    b1 = _leaky_relu(aggr_msgs[src] @ w[:, C_N1A:C_N1A + H_DIM]
                     + encoded @ w[:, C_N1B_Z:C_N1B_Z + H_DIM] + b[B_N1])
    b2 = _leaky_relu(b1 @ w[:, C_N2:C_N2 + H_DIM] + b[B_N2])
    msg = a_node[src] + b2
    aggr_out = jax.ops.segment_sum(msg, dst, num_segments=n_nodes)
    h_node_new = _leaky_relu(h_node0 @ w[:, C_NN1_UA + H_DIM:C_NN1_UA + 2 * H_DIM]
                             + aggr_out @ w[:, C_UB:C_UB + H_DIM] + b[B_U])
    y_msg = jax.nn.softmax(msg @ params["wd"] + params["bd"], axis=-1)
    y_beliefs = jax.nn.softmax(h_node_new @ params["wb"] + params["bb"], axis=-1)
    return msg, y_msg, y_beliefs


if __name__ == "__main__":
    key = jax.random.PRNGKey(0)
    k_x, k_ei, k_msg, k_par = jax.random.split(key, 4)

    N_NODES, N_EDGES = 16, 32

    # node features: column 0 is the "variable node" flag in {0,1}, rest random
    flag = (jnp.arange(N_NODES) < N_NODES // 2).astype(jnp.float32)[:, None]
    feat = jax.random.normal(k_x, (N_NODES, X_DIM - 1), jnp.float32)
    x = jnp.concatenate([flag, feat], axis=-1)                       # [N, 3]

    edge_index = jax.random.randint(k_ei, (2, N_EDGES), 0, N_NODES, jnp.int32)
    h_msg = jax.random.normal(k_msg, (N_EDGES, H_DIM), jnp.float32)  # [E, 32]

    params = init_params(k_par)

    h_msg_new, y_msg, y_beliefs, mask = mpnn_sender_aggr_loop(x, edge_index, h_msg, params)
    jax.block_until_ready((h_msg_new, y_msg, y_beliefs, mask))

    assert h_msg_new.shape == (N_EDGES, H_DIM)
    assert y_msg.shape == (N_EDGES, MSG_DIM)
    assert y_beliefs.shape == (N_NODES, BELIEF_DIM)
    assert bool(jnp.all(jnp.isfinite(h_msg_new)))
    assert bool(jnp.allclose(jnp.sum(y_msg, axis=-1), 1.0, atol=1e-5))
    assert bool(jnp.allclose(jnp.sum(y_beliefs, axis=-1), 1.0, atol=1e-5))

    ref_msg, ref_ymsg, ref_beliefs = _reference(x, edge_index, h_msg, params)
    # loose tolerance: MXU f32 matmul pass structure vs XLA reference may differ
    assert bool(jnp.allclose(h_msg_new, ref_msg, atol=1e-2, rtol=1e-2))
    assert bool(jnp.allclose(y_msg, ref_ymsg, atol=1e-2, rtol=1e-2))
    assert bool(jnp.allclose(y_beliefs, ref_beliefs, atol=1e-2, rtol=1e-2))

    print("KERNEL_OK")
</pallas_src>

<mosaic_0001>
module attributes {stable_mosaic.version = 11 : i64} {
  func.func @mpnn_kernel(%arg0: memref<16x32xf32, #tpu.memory_space<vmem>>, %arg1: memref<32x32xf32, #tpu.memory_space<vmem>>, %arg2: memref<32x16xf32, #tpu.memory_space<vmem>>, %arg3: memref<16x32xf32, #tpu.memory_space<vmem>>, %arg4: memref<32x320xf32, #tpu.memory_space<vmem>>, %arg5: memref<7x32xf32, #tpu.memory_space<vmem>>, %arg6: memref<32x32xf32, #tpu.memory_space<vmem>>, %arg7: memref<16x32xf32, #tpu.memory_space<vmem>>) attributes {dimension_semantics = [], scalar_prefetch = 0 : i64, scratch_operands = 0 : i64, tpu.core_type = #tpu.core_type<tc>} {
    %c0 = arith.constant 0 : index
    %c0_0 = arith.constant 0 : index
    %0 = vector.load %arg0[%c0, %c0_0] : memref<16x32xf32, #tpu.memory_space<vmem>>, vector<16x32xf32>
    %c0_1 = arith.constant 0 : index
    %c0_2 = arith.constant 0 : index
    %1 = vector.load %arg1[%c0_1, %c0_2] : memref<32x32xf32, #tpu.memory_space<vmem>>, vector<32x32xf32>
    %c0_3 = arith.constant 0 : index
    %c0_4 = arith.constant 0 : index
    %2 = vector.load %arg2[%c0_3, %c0_4] : memref<32x16xf32, #tpu.memory_space<vmem>>, vector<32x16xf32>
    %c0_5 = arith.constant 0 : index
    %c0_6 = arith.constant 0 : index
    %3 = vector.load %arg3[%c0_5, %c0_6] : memref<16x32xf32, #tpu.memory_space<vmem>>, vector<16x32xf32>
    %c0_7 = arith.constant 0 : index
    %c0_8 = arith.constant 0 : index
    %4 = vector.load %arg4[%c0_7, %c0_8] : memref<32x320xf32, #tpu.memory_space<vmem>>, vector<32x32xf32>
    %cst = arith.constant dense<0.000000e+00> : vector<16x32xf32>
    %5 = tpu.matmul %0, %4, %cst {dimension_numbers = #tpu.dot_dimension_numbers<[1], [0], [0], [1], [0, 0, 1, 1], [], []>} : vector<16x32xf32>, vector<32x32xf32>, vector<16x32xf32> -> vector<16x32xf32>
    %c0_9 = arith.constant 0 : index
    %c0_10 = arith.constant 0 : index
    %6 = vector.load %arg5[%c0_9, %c0_10] : memref<7x32xf32, #tpu.memory_space<vmem>>, vector<1x32xf32>
    %7 = vector.broadcast %6 : vector<1x32xf32> to vector<16x32xf32>
    %8 = arith.addf %5, %7 : vector<16x32xf32>
    %c0_11 = arith.constant 0 : index
    %c32 = arith.constant 32 : index
    %9 = vector.load %arg4[%c0_11, %c32] : memref<32x320xf32, #tpu.memory_space<vmem>>, vector<32x32xf32>
    %cst_12 = arith.constant dense<0.000000e+00> : vector<32x32xf32>
    %10 = tpu.matmul %1, %9, %cst_12 {dimension_numbers = #tpu.dot_dimension_numbers<[1], [0], [0], [1], [0, 0, 1, 1], [], []>} : vector<32x32xf32>, vector<32x32xf32>, vector<32x32xf32> -> vector<32x32xf32>
    %c1 = arith.constant 1 : index
    %c0_13 = arith.constant 0 : index
    %11 = vector.load %arg5[%c1, %c0_13] : memref<7x32xf32, #tpu.memory_space<vmem>>, vector<1x32xf32>
    %12 = vector.broadcast %11 : vector<1x32xf32> to vector<32x32xf32>
    %13 = arith.addf %10, %12 : vector<32x32xf32>
    %cst_14 = arith.constant dense<0.000000e+00> : vector<16x32xf32>
    %14 = tpu.matmul %3, %13, %cst_14 {dimension_numbers = #tpu.dot_dimension_numbers<[1], [0], [0], [1], [0, 0, 1, 1], [], []>} : vector<16x32xf32>, vector<32x32xf32>, vector<16x32xf32> -> vector<16x32xf32>
    %c0_15 = arith.constant 0 : index
    %c64 = arith.constant 64 : index
    %15 = vector.load %arg4[%c0_15, %c64] : memref<32x320xf32, #tpu.memory_space<vmem>>, vector<32x64xf32>
    %cst_16 = arith.constant dense<0.000000e+00> : vector<16x64xf32>
    %16 = tpu.matmul %8, %15, %cst_16 {dimension_numbers = #tpu.dot_dimension_numbers<[1], [0], [0], [1], [0, 0, 1, 1], [], []>} : vector<16x32xf32>, vector<32x64xf32>, vector<16x64xf32> -> vector<16x64xf32>
    %17 = vector.extract_strided_slice %16 {offsets = [0, 0], sizes = [16, 32], strides = [1, 1]} : vector<16x64xf32> to vector<16x32xf32>
    %c2 = arith.constant 2 : index
    %c0_17 = arith.constant 0 : index
    %18 = vector.load %arg5[%c2, %c0_17] : memref<7x32xf32, #tpu.memory_space<vmem>>, vector<1x32xf32>
    %19 = vector.broadcast %18 : vector<1x32xf32> to vector<16x32xf32>
    %20 = arith.addf %17, %19 : vector<16x32xf32>
    %cst_18 = arith.constant 0.000000e+00 : f32
    %21 = vector.broadcast %cst_18 : f32 to vector<16x32xf32>
    %22 = arith.cmpf oge, %20, %21 : vector<16x32xf32>
    %cst_19 = arith.constant 0.00999999977 : f32
    %23 = vector.broadcast %cst_19 : f32 to vector<16x32xf32>
    %24 = arith.mulf %23, %20 : vector<16x32xf32>
    %25 = arith.select %22, %20, %24 : vector<16x32xi1>, vector<16x32xf32>
    %26 = vector.extract_strided_slice %16 {offsets = [0, 32], sizes = [16, 32], strides = [1, 1]} : vector<16x64xf32> to vector<16x32xf32>
    %c0_20 = arith.constant 0 : index
    %c128 = arith.constant 128 : index
    %27 = vector.load %arg4[%c0_20, %c128] : memref<32x320xf32, #tpu.memory_space<vmem>>, vector<32x32xf32>
    %cst_21 = arith.constant dense<0.000000e+00> : vector<16x32xf32>
    %28 = tpu.matmul %25, %27, %cst_21 {dimension_numbers = #tpu.dot_dimension_numbers<[1], [0], [0], [1], [0, 0, 1, 1], [], []>} : vector<16x32xf32>, vector<32x32xf32>, vector<16x32xf32> -> vector<16x32xf32>
    %c3 = arith.constant 3 : index
    %c0_22 = arith.constant 0 : index
    %29 = vector.load %arg5[%c3, %c0_22] : memref<7x32xf32, #tpu.memory_space<vmem>>, vector<1x32xf32>
    %30 = vector.broadcast %29 : vector<1x32xf32> to vector<16x32xf32>
    %31 = arith.addf %28, %30 : vector<16x32xf32>
    %cst_23 = arith.constant 0.000000e+00 : f32
    %32 = vector.broadcast %cst_23 : f32 to vector<16x32xf32>
    %33 = arith.cmpf oge, %31, %32 : vector<16x32xf32>
    %cst_24 = arith.constant 0.00999999977 : f32
    %34 = vector.broadcast %cst_24 : f32 to vector<16x32xf32>
    %35 = arith.mulf %34, %31 : vector<16x32xf32>
    %36 = arith.select %33, %31, %35 : vector<16x32xi1>, vector<16x32xf32>
    %c0_25 = arith.constant 0 : index
    %c160 = arith.constant 160 : index
    %37 = vector.load %arg4[%c0_25, %c160] : memref<32x320xf32, #tpu.memory_space<vmem>>, vector<32x32xf32>
    %cst_26 = arith.constant dense<0.000000e+00> : vector<16x32xf32>
    %38 = tpu.matmul %14, %37, %cst_26 {dimension_numbers = #tpu.dot_dimension_numbers<[1], [0], [0], [1], [0, 0, 1, 1], [], []>} : vector<16x32xf32>, vector<32x32xf32>, vector<16x32xf32> -> vector<16x32xf32>
    %39 = tpu.concatenate %2, %13 in 1 : vector<32x16xf32>, vector<32x32xf32> -> vector<32x48xf32>
    %40 = tpu.concatenate %38, %36 in 1 : vector<16x32xf32>, vector<16x32xf32> -> vector<16x64xf32>
    %c0_27 = arith.constant 0 : index
    %c256 = arith.constant 256 : index
    %41 = vector.load %arg4[%c0_27, %c256] : memref<32x320xf32, #tpu.memory_space<vmem>>, vector<32x64xf32>
    %42 = tpu.concatenate %40, %41 in 0 : vector<16x64xf32>, vector<32x64xf32> -> vector<48x64xf32>
    %cst_28 = arith.constant dense<0.000000e+00> : vector<32x64xf32>
    %43 = tpu.matmul %39, %42, %cst_28 {dimension_numbers = #tpu.dot_dimension_numbers<[1], [0], [0], [1], [0, 0, 1, 1], [], []>} : vector<32x48xf32>, vector<48x64xf32>, vector<32x64xf32> -> vector<32x64xf32>
    %44 = vector.extract_strided_slice %43 {offsets = [0, 0], sizes = [32, 32], strides = [1, 1]} : vector<32x64xf32> to vector<32x32xf32>
    %c4 = arith.constant 4 : index
    %c0_29 = arith.constant 0 : index
    %45 = vector.load %arg5[%c4, %c0_29] : memref<7x32xf32, #tpu.memory_space<vmem>>, vector<1x32xf32>
    %46 = vector.broadcast %45 : vector<1x32xf32> to vector<32x32xf32>
    %47 = arith.addf %44, %46 : vector<32x32xf32>
    %cst_30 = arith.constant 0.000000e+00 : f32
    %48 = vector.broadcast %cst_30 : f32 to vector<32x32xf32>
    %49 = arith.cmpf oge, %47, %48 : vector<32x32xf32>
    %cst_31 = arith.constant 0.00999999977 : f32
    %50 = vector.broadcast %cst_31 : f32 to vector<32x32xf32>
    %51 = arith.mulf %50, %47 : vector<32x32xf32>
    %52 = arith.select %49, %47, %51 : vector<32x32xi1>, vector<32x32xf32>
    %c0_32 = arith.constant 0 : index
    %c192 = arith.constant 192 : index
    %53 = vector.load %arg4[%c0_32, %c192] : memref<32x320xf32, #tpu.memory_space<vmem>>, vector<32x32xf32>
    %cst_33 = arith.constant dense<0.000000e+00> : vector<32x32xf32>
    %54 = tpu.matmul %52, %53, %cst_33 {dimension_numbers = #tpu.dot_dimension_numbers<[1], [0], [0], [1], [0, 0, 1, 1], [], []>} : vector<32x32xf32>, vector<32x32xf32>, vector<32x32xf32> -> vector<32x32xf32>
    %c5 = arith.constant 5 : index
    %c0_34 = arith.constant 0 : index
    %55 = vector.load %arg5[%c5, %c0_34] : memref<7x32xf32, #tpu.memory_space<vmem>>, vector<1x32xf32>
    %56 = vector.broadcast %55 : vector<1x32xf32> to vector<32x32xf32>
    %57 = arith.addf %54, %56 : vector<32x32xf32>
    %cst_35 = arith.constant 0.000000e+00 : f32
    %58 = vector.broadcast %cst_35 : f32 to vector<32x32xf32>
    %59 = arith.cmpf oge, %57, %58 : vector<32x32xf32>
    %cst_36 = arith.constant 0.00999999977 : f32
    %60 = vector.broadcast %cst_36 : f32 to vector<32x32xf32>
    %61 = arith.mulf %60, %57 : vector<32x32xf32>
    %62 = arith.select %59, %57, %61 : vector<32x32xi1>, vector<32x32xf32>
    %63 = vector.extract_strided_slice %43 {offsets = [0, 32], sizes = [32, 32], strides = [1, 1]} : vector<32x64xf32> to vector<32x32xf32>
    %64 = arith.addf %63, %62 : vector<32x32xf32>
    %cst_37 = arith.constant dense<0.000000e+00> : vector<16x32xf32>
    %65 = tpu.matmul %3, %64, %cst_37 {dimension_numbers = #tpu.dot_dimension_numbers<[1], [0], [0], [1], [0, 0, 1, 1], [], []>} : vector<16x32xf32>, vector<32x32xf32>, vector<16x32xf32> -> vector<16x32xf32>
    %c0_38 = arith.constant 0 : index
    %c224 = arith.constant 224 : index
    %66 = vector.load %arg4[%c0_38, %c224] : memref<32x320xf32, #tpu.memory_space<vmem>>, vector<32x32xf32>
    %cst_39 = arith.constant dense<0.000000e+00> : vector<16x32xf32>
    %67 = tpu.matmul %65, %66, %cst_39 {dimension_numbers = #tpu.dot_dimension_numbers<[1], [0], [0], [1], [0, 0, 1, 1], [], []>} : vector<16x32xf32>, vector<32x32xf32>, vector<16x32xf32> -> vector<16x32xf32>
    %68 = arith.addf %26, %67 : vector<16x32xf32>
    %c6 = arith.constant 6 : index
    %c0_40 = arith.constant 0 : index
    %69 = vector.load %arg5[%c6, %c0_40] : memref<7x32xf32, #tpu.memory_space<vmem>>, vector<1x32xf32>
    %70 = vector.broadcast %69 : vector<1x32xf32> to vector<16x32xf32>
    %71 = arith.addf %68, %70 : vector<16x32xf32>
    %cst_41 = arith.constant 0.000000e+00 : f32
    %72 = vector.broadcast %cst_41 : f32 to vector<16x32xf32>
    %73 = arith.cmpf oge, %71, %72 : vector<16x32xf32>
    %cst_42 = arith.constant 0.00999999977 : f32
    %74 = vector.broadcast %cst_42 : f32 to vector<16x32xf32>
    %75 = arith.mulf %74, %71 : vector<16x32xf32>
    %76 = arith.select %73, %71, %75 : vector<16x32xi1>, vector<16x32xf32>
    %c0_43 = arith.constant 0 : index
    %c0_44 = arith.constant 0 : index
    %77 = vector.load %arg6[%c0_43, %c0_44] : memref<32x32xf32, #tpu.memory_space<vmem>>, vector<32x32xf32>
    tpu.vector_store %arg6[%c0_43, %c0_44], %64 {strides = array<i32>} : memref<32x32xf32, #tpu.memory_space<vmem>>, vector<32x32xf32>,
    %c0_45 = arith.constant 0 : index
    %c0_46 = arith.constant 0 : index
    %78 = vector.load %arg7[%c0_45, %c0_46] : memref<16x32xf32, #tpu.memory_space<vmem>>, vector<16x32xf32>
    tpu.vector_store %arg7[%c0_45, %c0_46], %76 {strides = array<i32>} : memref<16x32xf32, #tpu.memory_space<vmem>>, vector<16x32xf32>,
    return
  }
}

</mosaic_0001>

<bundles_post_ra>
// kernel: mpnn_sender_aggr_loop.1
= control target key start
LH: loop header
LB: loop body
LE: loop exit
PB: predicated region body
PF: predicated region fallthrough
CT: control target
= control target key end

     0   :  { %vm46_vm0 = vcmask 261120   ;;  %s1526_s13 = smov 96   ;;  %s1527_s14 = smov 64   ;;  %vm642_vm3 = vcmask 130048   ;;  %vm661_vm4 = vcmask 392192   ;;  %s1789_s4 = inlined_call_operand.vmem [shape: f32[32,320], index: 4, kind: input, shape index: {}]   ;;  %s1790_s0 = inlined_call_operand.vmem [shape: f32[16,32], index: 0, kind: input, shape index: {}]   ;;  %s1791_s1 = inlined_call_operand.vmem [shape: f32[32,32], index: 1, kind: input, shape index: {}, may-alias: {1,6}]   ;;  %s1792_s5 = inlined_call_operand.vmem [shape: f32[7,32], index: 5, kind: input, shape index: {}]   ;;  %s1793_s3 = inlined_call_operand.vmem [shape: f32[16,32], index: 3, kind: input, shape index: {}]   ;;  %s1794_s2 = inlined_call_operand.vmem [shape: f32[32,16], index: 2, kind: input, shape index: {}]   ;;  %s1795_s6 = inlined_call_operand.vmem [shape: f32[32,32], index: 6, kind: output, shape index: {0}, may-alias: {1,6}]   ;;  %s1796_s7 = inlined_call_operand.vmem [shape: f32[16,32], index: 7, kind: output, shape index: {1}]  }
   0x1   :  { %v37_v0 = vld [vmem:[%s1789_s4] sm:$0xff]  ;;  %v38_v1 = vld [vmem:[%s1789_s4 + $0x18] sm:$0xff]  ;;  %v39_v2 = vld [vmem:[%s1789_s4 + $0x30] sm:$0xff]  ;;  %s1528_s12 = smov 16   ;;  %s1529_s21 = smov 32  }
   0x2   :  { %v1471_v3 = vpack.i.bf16 %v38_v1, %v37_v0  ;;  %v1383_v4 = vpack.c.bf16 %v38_v1, %v37_v0  ;;  %v40_v5 = vld [vmem:[%s1789_s4 + $0x48] sm:$0xff]  ;;  %v25_v6 = vld [vmem:[%s1790_s0] sm:$0xff]  ;;  %v1601_v11 = vld [vmem:[%s1789_s4 + $0x38] sm:$0xff] }
   0x3   :  { %v1387_v7 = vpack.c.bf16 %v40_v5, %v39_v2  ;;  %1268 = vmatprep.mubr.msk.f32.mxu0 %vm46_vm0, %v25_v6  ;;  %v27_v8 = vld [vmem:[%s1791_s1] sm:$0xff]  ;;  %v1476_v9 = vpack.i.bf16 %v40_v5, %v39_v2  ;;  %v26_v10 = vld [vmem:[%s1790_s0 + $0x8] sm:$0xff]  ;;  %v1606_v12 = vld [vmem:[%s1789_s4 + $0x50] sm:$0xff] }
   0x4   :  { %1472 = vrot.lane.b32.xlu0 %v1471_v3, %s1526_s13  ;;  %1384 = vmatprep.subr.bf16.mxu0 %v1383_v4  ;;  %v1610_v13 = vpack.i.bf16 %v1606_v12, %v1601_v11  ;;  %v28_v29 = vld [vmem:[%s1791_s1 + $0x8] sm:$0xff]  ;;  %v29_v30 = vld [vmem:[%s1791_s1 + $0x10] sm:$0xff]  ;;  %v30_v32 = vld [vmem:[%s1791_s1 + $0x18] sm:$0xff]  ;;  %v1419_v55 = vpack.c.bf16 %v1606_v12, %v1601_v11 }
   0x5   :  { %1386 = vmatpush3.bf16.msra.mxu0 %v1383_v4  ;;  %1482 = vrot.lane.b32.xlu1 %v1471_v3, %s1527_s14  ;;  %v1159_v33 = vld [vmem:[%s1792_s5] ss:$0 sm:$0xff]  ;;  %v433_v39 = vld [vmem:[%s1789_s4 + $0x8] sm:$0xff]  ;;  %v1162_v42 = vld [vmem:[%s1792_s5 + $0x1] ss:$0 sm:$0xff] }
   0x6   :  { %1388 = vmatprep.subr.bf16.mxu0 %v1387_v7  ;;  %1279 = vmatprep.mubr.msk.f32.mxu1 %vm46_vm0, %v27_v8  ;;  %v1632_v38 = vld [vmem:[%s1793_s3] sm:$0xff]  ;;  %v1662_v54 = vld [vmem:[%s1793_s3 + $0x8] sm:$0xff] }
   0x7   :  { %v434_v40 = vld [vmem:[%s1789_s4 + $0x20] sm:$0xff] }
   0x8   :  { %1477 = vrot.lane.b32.xlu0 %v1476_v9, %s1526_s13  ;;  %v1644_v41 = vpack.i.bf16 %v434_v40, %v433_v39  ;;  %v1415_v53 = vpack.c.bf16 %v434_v40, %v433_v39  ;;  %v1171_v0 = vld [vmem:[%s1792_s5 + $0x2] ss:$0 sm:$0xff]  ;;  %v660_v39 = vld [vmem:[%s1789_s4 + $0x58] sm:$0xff] }
   0x9   :  { %1390 = vmatpush3.bf16.msra.mxu0 %v1387_v7  ;;  %1487 = vrot.lane.b32.xlu1 %v1476_v9, %s1527_s14  ;;  %v31_v9 = vld [vmem:[%s1794_s2] sm:$0xff] }
   0xc   :  { %1269 = vmatmul.mubr.msk.f32.vlgmr.msra.gmra.mrb[0].mxu0 %vm46_vm0, %v26_v10  ;;  %1492 = vrot.lane.b32.xlu0 %v1644_v41, %s1526_s13 }
   0xd   :  { %1497 = vrot.lane.b32.xlu1 %v1610_v13, %s1526_s13  ;;  %1293 = vmatprep.mubr.msk.f32.mxu0 %vm46_vm0, %v1632_v38 }
  0x76   :  { %v1473_v14 = vpop.permute.xlu0 %1472 }
  0x77   :  { %v1475_v15 = vunpack.i.h.bf16 %v1473_v14  ;;  %v1474_v16 = vunpack.i.l.bf16 %v1473_v14  ;;  %v1483_v17 = vpop.permute.xlu1 %1482 }
  0x78   :  { %v1485_v19 = vunpack.i.h.bf16 %v1483_v17  ;;  %v1484_v20 = vunpack.i.l.bf16 %v1483_v17 }
  0x79   :  { %v1391_v18 = vpack.c.bf16 %v1475_v15, %v1474_v16  ;;  %v1172_v15 = vld [vmem:[%s1792_s5 + $0x3] ss:$0 sm:$0xff] }
  0x7a   :  { %v1478_v21 = vpop.permute.xlu0 %1477  ;;  %v1407_v26 = vpack.c.bf16 %v1485_v19, %v1484_v20 }
  0x7b   :  { %v1480_v22 = vunpack.i.h.bf16 %v1478_v21  ;;  %v1479_v23 = vunpack.i.l.bf16 %v1478_v21  ;;  %1392 = vmatprep.subr.bf16.mxu1 %v1391_v18  ;;  %v1488_v24 = vpop.permute.xlu1 %1487 }
  0x7c   :  { %1394 = vmatpush3.bf16.msra.mxu1 %v1391_v18  ;;  %v1490_v27 = vunpack.i.h.bf16 %v1488_v24  ;;  %v1489_v28 = vunpack.i.l.bf16 %v1488_v24 }
  0x7d   :  { %v1395_v25 = vpack.c.bf16 %v1480_v22, %v1479_v23 }
  0x7e   :  { %v1411_v31 = vpack.c.bf16 %v1490_v27, %v1489_v28  ;;  %v1493_v59 = vpop.permute.xlu0 %1492 }
  0x7f   :  { %1396 = vmatprep.subr.bf16.mxu1 %v1395_v25  ;;  %v1498_v56 = vpop.permute.xlu1 %1497  ;;  %v1495_v60 = vunpack.i.h.bf16 %v1493_v59  ;;  %v1494_v61 = vunpack.i.l.bf16 %v1493_v59  ;;  %v1181_v59 = vld [vmem:[%s1792_s5 + $0x4] ss:$0 sm:$0xff] }
  0x80   :  { %1398 = vmatpush3.bf16.msra.mxu1 %v1395_v25  ;;  %v1500_v57 = vunpack.i.h.bf16 %v1498_v56  ;;  %v1499_v58 = vunpack.i.l.bf16 %v1498_v56 }
  0x81   :  { %1408 = vmatprep.subr.bf16.mxu1 %v1407_v26  ;;  %v1423_v63 = vpack.c.bf16 %v1495_v60, %v1494_v61 }
  0x82   :  { %v1427_v62 = vpack.c.bf16 %v1500_v57, %v1499_v58  ;;  %v34_v57 = vld [vmem:[%s1794_s2 + $0x18] sm:$0xff] }
  0x83   :  { %1280 = vmatmul.mubr.msk.f32.vlgmr.msra.gmra.mrb[0].mxu1 %vm46_vm0, %v28_v29 }
  0x84   :  { %1282 = vmatprep.mubr.msk.f32.mxu1 %vm46_vm0, %v29_v30  ;;  %1410 = vmatpush3.bf16.msra.mxu1 %v1407_v26  ;;  %v657_v30 = vld [vmem:[%s1789_s4 + $0x10] sm:$0xff] }
  0x85   :  { %1412 = vmatprep.subr.bf16.mxu1 %v1411_v31 }
  0x87   :  { %1283 = vmatmul.mubr.msk.f32.gmra.mrb[2].mxu1 %vm46_vm0, %v30_v32 }
  0x88   :  { %1414 = vmatpush3.bf16.msra.mxu1 %v1411_v31  ;;  %v658_v31 = vld [vmem:[%s1789_s4 + $0x28] sm:$0xff] }
  0x89   :  { %1424 = vmatprep.subr.bf16.mxu1 %v1423_v63 }
  0xdf   :  { %v1270_v34 = vpop.f32.mrb[0].mxu0 }
  0xe0   :  { %v119_v35 = vpop.f32.mrb[1].mxu0  ;;  %v125_v37 = vadd.f32 %v1270_v34, %v1159_v33 }
  0xe1   :  { %v120_v36 = vadd.f32 %v1159_v33, %v119_v35 }
  0xe3   :  { %1304 = vmatprep.mubr.msk.f32.mxu1 %vm46_vm0, %v120_v36  ;;  %v1435_v36 = vpack.c.bf16 %v658_v31, %v657_v30 }
  0xe4   :  { %1305 = vmatmul.mubr.msk.f32.vlgmr.msra.gmra.mrb[4].mxu1 %vm46_vm0, %v125_v37  ;;  %v659_v37 = vld [vmem:[%s1789_s4 + $0x40] sm:$0xff] }
  0xe5   :  { %1426 = vmatpush3.bf16.msra.mxu1 %v1423_v63 }
  0xe6   :  { %1428 = vmatprep.subr.bf16.mxu1 %v1427_v62 }
  0xe9   :  { %1430 = vmatpush3.bf16.msra.mxu1 %v1427_v62 }
 0x156   :  { %v1281_v43 = vpop.f32.mrb[0].mxu1 }
 0x157   :  { %v1651_v44 = vadd.f32 %v1281_v43, %v1162_v42  ;;  %v227_v45 = vpop.f32.mrb[1].mxu1  ;;  %v1439_v43 = vpack.c.bf16 %v660_v39, %v659_v37 }
 0x158   :  { %v228_v46 = vadd.f32 %v1162_v42, %v227_v45 }
 0x15a   :  { %v1399_v47 = vpack.c.bf16 %v1651_v44, %v228_v46  ;;  %v1284_v48 = vpop.f32.mrb[2].mxu1  ;;  %630 = vrot.lane.b32.xlu1 %v228_v46, %s1528_s12 }
 0x15b   :  { %v1655_v49 = vadd.f32 %v1284_v48, %v1162_v42  ;;  %v237_v50 = vpop.f32.mrb[3].mxu1 }
 0x15c   :  { %v238_v51 = vadd.f32 %v1162_v42, %v237_v50  ;;  %1400 = vmatprep.subr.bf16.mxu0 %v1399_v47 }
 0x15d   :  { %1402 = vmatpush3.bf16.msra.mxu0 %v1399_v47 }
 0x15e   :  { %v1403_v52 = vpack.c.bf16 %v1655_v49, %v238_v51  ;;  %634 = vrot.lane.b32.xlu1 %v238_v51, %s1528_s12  ;;  %v32_v51 = vld [vmem:[%s1794_s2 + $0x8] sm:$0xff] }
 0x160   :  { %1404 = vmatprep.subr.bf16.mxu0 %v1403_v52 }
 0x161   :  { %1406 = vmatpush3.bf16.msra.mxu0 %v1403_v52  ;;  %v33_v52 = vld [vmem:[%s1794_s2 + $0x10] sm:$0xff] }
 0x162   :  { %1416 = vmatprep.subr.bf16.mxu0 %v1415_v53  ;;  %1507 = vrot.lane.b32.xlu1 %v1644_v41, %s1527_s14 }
 0x164   :  { %1294 = vmatmul.mubr.msk.f32.vlgmr.msra.gmra.mrb[2].mxu0 %vm46_vm0, %v1662_v54 }
 0x165   :  { %1418 = vmatpush3.bf16.msra.mxu0 %v1415_v53 }
 0x166   :  { %1420 = vmatprep.subr.bf16.mxu0 %v1419_v55 }
 0x169   :  { %1422 = vmatpush3.bf16.msra.mxu0 %v1419_v55 }
 0x1b7   :  { %v1671_v1 = vpop.f32.mrb[4].mxu1 }
 0x1b8   :  { %v426_v2 = vadd.f32 %v1671_v1, %v1171_v0  ;;  %v1674_v3 = vpop.f32.mrb[5].mxu1 }
 0x1b9   :  { %v425_v4 = vadd.f32 %v1171_v0, %v1674_v3 }
 0x1ba   :  { %v430_v5 = vmul.f32 0.01, %v426_v2  ;;  %vm428_vm1 = vcmp.ge.f32.partialorder %v426_v2, 0.0 }
 0x1bb   :  { %v429_v6 = vmul.f32 0.01, %v425_v4  ;;  %vm427_vm2 = vcmp.ge.f32.partialorder %v425_v4, 0.0 }
 0x1bc   :  { %v432_v8 = vsel %vm428_vm1, %v426_v2, %v430_v5 }
 0x1bd   :  { %v431_v7 = vsel %vm427_vm2, %v425_v4, %v429_v6 }
 0x1be   :  { %1315 = vmatprep.mubr.msk.f32.mxu0 %vm46_vm0, %v431_v7 }
 0x1bf   :  { %1316 = vmatmul.mubr.msk.f32.vlgmr.msra.gmra.mrb[4].mxu0 %vm46_vm0, %v432_v8 }
 0x1cc   :  { %v631_v10 = vpop.permute.xlu1 %630 }
 0x1cd   :  { %v643_v11 = vsel %vm642_vm3, %v31_v9, %v631_v10 }
 0x1ce   :  { %1341 = vmatprep.mubr.msk.f32.mxu0 %vm661_vm4, %v643_v11 }
 0x1d0   :  { %v635_v40 = vpop.permute.xlu1 %634 }
 0x1d1   :  { %v645_v56 = vsel %vm642_vm3, %v33_v52, %v635_v40 }
 0x237   :  { %v1295_v12 = vpop.f32.mrb[2].mxu0 }
 0x238   :  { %v318_v14 = vpop.f32.mrb[3].mxu0 }
 0x239   :  { %1326 = vmatprep.mubr.msk.f32.mxu1 %vm46_vm0, %v318_v14 }
 0x23a   :  { %1327 = vmatmul.mubr.msk.f32.vlgmr.msra.gmra.mrb[6].mxu1 %vm46_vm0, %v1295_v12 }
 0x292   :  { %v1317_v16 = vpop.f32.mrb[4].mxu0 }
 0x293   :  { %v520_v17 = vadd.f32 %v1317_v16, %v1172_v15  ;;  %v514_v18 = vpop.f32.mrb[5].mxu0 }
 0x294   :  { %v515_v19 = vadd.f32 %v1172_v15, %v514_v18  ;;  %v1182_v15 = vld [vmem:[%s1792_s5 + $0x5] ss:$0 sm:$0xff] }
 0x295   :  { %vm524_vm5 = vcmp.ge.f32.partialorder %v520_v17, 0.0  ;;  %v526_v20 = vmul.f32 0.01, %v520_v17 }
 0x296   :  { %vm523_vm6 = vcmp.ge.f32.partialorder %v515_v19, 0.0  ;;  %v525_v21 = vmul.f32 0.01, %v515_v19 }
 0x297   :  { %v528_v22 = vsel %vm524_vm5, %v520_v17, %v526_v20 }
 0x298   :  { %v527_v23 = vsel %vm523_vm6, %v515_v19, %v525_v21 }
 0x299   :  { %v1501_v24 = vpack.i.bf16 %v528_v22, %v527_v23 }
 0x29b   :  { %1502 = vrot.lane.b32.xlu0 %v1501_v24, %s1529_s21 }
 0x29f   :  { %632 = vrot.lane.b32.xlu0 %v1651_v44, %s1528_s12  ;;  %v1508_v44 = vpop.permute.xlu1 %1507 }
 0x2a0   :  { %v1510_v45 = vunpack.i.h.bf16 %v1508_v44  ;;  %v1509_v46 = vunpack.i.l.bf16 %v1508_v44 }
 0x2a2   :  { %v1443_v48 = vpack.c.bf16 %v1510_v45, %v1509_v46 }
 0x2a3   :  { %636 = vrot.lane.b32.xlu0 %v1655_v49, %s1528_s12 }
 0x2a4   :  { %1444 = vmatprep.subr.bf16.mxu1 %v1443_v48 }
 0x2a5   :  { %1446 = vmatpush3.bf16.msra.mxu1 %v1443_v48 }
 0x2a7   :  { %1512 = vrot.lane.b32.xlu0 %v1610_v13, %s1527_s14 }
 0x30d   :  { %v1328_v25 = vpop.f32.mrb[6].mxu1  ;;  %v1503_v26 = vpop.permute.xlu0 %1502 }
 0x30e   :  { %v1505_v27 = vunpack.i.h.bf16 %v1503_v26  ;;  %v1504_v28 = vunpack.i.l.bf16 %v1503_v26  ;;  %v617_v29 = vpop.f32.mrb[7].mxu1 }
 0x310   :  { %v655_v32 = vsel %vm46_vm0, %v617_v29, %v1504_v28  ;;  %v656_v33 = vsel %vm46_vm0, %v1328_v25, %v1505_v27 }
 0x311   :  { %v1431_v34 = vpack.c.bf16 %v656_v33, %v655_v32  ;;  %v633_v35 = vpop.permute.xlu0 %632 }
 0x312   :  { %v644_v55 = vsel %vm642_vm3, %v32_v51, %v633_v35 }
 0x313   :  { %1432 = vmatprep.subr.bf16.mxu0 %v1431_v34 }
 0x314   :  { %1434 = vmatpush3.bf16.msra.mxu0 %v1431_v34 }
 0x315   :  { %v637_v42 = vpop.permute.xlu0 %636  ;;  %1436 = vmatprep.subr.bf16.mxu0 %v1435_v36 }
 0x316   :  { %v646_v58 = vsel %vm642_vm3, %v34_v57, %v637_v42 }
 0x318   :  { %1438 = vmatpush3.bf16.msra.mxu0 %v1435_v36 }
 0x319   :  { %1440 = vmatprep.subr.bf16.mxu0 %v1439_v43  ;;  %v1513_v47 = vpop.permute.xlu0 %1512 }
 0x31a   :  { %v1515_v49 = vunpack.i.h.bf16 %v1513_v47  ;;  %v1514_v50 = vunpack.i.l.bf16 %v1513_v47 }
 0x31c   :  { %1442 = vmatpush3.bf16.msra.mxu0 %v1439_v43  ;;  %v1447_v53 = vpack.c.bf16 %v1515_v49, %v1514_v50 }
 0x31e   :  { %1448 = vmatprep.subr.bf16.mxu1 %v1447_v53 }
 0x31f   :  { %1342 = vmatmul.mubr.msk.f32.vlgmr.msra.gmra.mrb[6].mxu0 %vm661_vm4, %v644_v55  ;;  %1450 = vmatpush3.bf16.msra.mxu1 %v1447_v53 }
 0x320   :  { %1344 = vmatprep.mubr.msk.f32.mxu0 %vm661_vm4, %v645_v56 }
 0x323   :  { %1345 = vmatmul.mubr.msk.f32.gmra.mrb[8].mxu0 %vm661_vm4, %v646_v58 }
 0x3f2   :  { %v1343_v60 = vpop.f32.mrb[6].mxu0 }
 0x3f3   :  { %v765_v61 = vadd.f32 %v1343_v60, %v1181_v59  ;;  %v740_v62 = vpop.f32.mrb[7].mxu0 }
 0x3f4   :  { %v764_v63 = vadd.f32 %v1181_v59, %v740_v62 }
 0x3f5   :  { %v773_v0 = vmul.f32 0.01, %v765_v61  ;;  %vm769_vm7 = vcmp.ge.f32.partialorder %v765_v61, 0.0 }
 0x3f6   :  { %v772_v2 = vmul.f32 0.01, %v764_v63  ;;  %v1346_v4 = vpop.f32.mrb[8].mxu0  ;;  %vm768_vm8 = vcmp.ge.f32.partialorder %v764_v63, 0.0 }
 0x3f7   :  { %v767_v5 = vadd.f32 %v1346_v4, %v1181_v59  ;;  %v750_v6 = vpop.f32.mrb[9].mxu0  ;;  %v777_v10 = vsel %vm769_vm7, %v765_v61, %v773_v0 }
 0x3f8   :  { %v766_v7 = vadd.f32 %v1181_v59, %v750_v6  ;;  %v776_v8 = vsel %vm768_vm8, %v764_v63, %v772_v2 }
 0x3f9   :  { %v775_v9 = vmul.f32 0.01, %v767_v5  ;;  %1355 = vmatprep.mubr.msk.f32.mxu1 %vm46_vm0, %v776_v8  ;;  %vm771_vm10 = vcmp.ge.f32.partialorder %v767_v5, 0.0 }
 0x3fa   :  { %v774_v11 = vmul.f32 0.01, %v766_v7  ;;  %1356 = vmatmul.mubr.msk.f32.vlgmr.msra.gmra.mrb[8].mxu1 %vm46_vm0, %v777_v10  ;;  %vm770_vm9 = vcmp.ge.f32.partialorder %v766_v7, 0.0 }
 0x3fb   :  { %v779_v14 = vsel %vm771_vm10, %v767_v5, %v775_v9 }
 0x3fc   :  { %v778_v12 = vsel %vm770_vm9, %v766_v7, %v774_v11 }
 0x3fd   :  { %1358 = vmatprep.mubr.msk.f32.mxu1 %vm46_vm0, %v778_v12 }
 0x3fe   :  { %1359 = vmatmul.mubr.msk.f32.gmra.mrb[10].mxu1 %vm46_vm0, %v779_v14 }
 0x3ff   :  { %1369 = vmatprep.mubr.msk.f32.mxu1 %vm46_vm0, %v1632_v38 }
 0x4cd   :  { %v1357_v16 = vpop.f32.mrb[8].mxu1 }
 0x4ce   :  { %v881_v17 = vadd.f32 %v1357_v16, %v1182_v15  ;;  %v875_v18 = vpop.f32.mrb[9].mxu1 }
 0x4cf   :  { %v876_v19 = vadd.f32 %v1182_v15, %v875_v18 }
 0x4d0   :  { %v899_v20 = vmul.f32 0.01, %v881_v17  ;;  %vm895_vm11 = vcmp.ge.f32.partialorder %v881_v17, 0.0 }
 0x4d1   :  { %v898_v21 = vmul.f32 0.01, %v876_v19  ;;  %v1360_v22 = vpop.f32.mrb[10].mxu1  ;;  %vm894_vm12 = vcmp.ge.f32.partialorder %v876_v19, 0.0 }
 0x4d2   :  { %v891_v23 = vadd.f32 %v1360_v22, %v1182_v15  ;;  %v885_v24 = vpop.f32.mrb[11].mxu1  ;;  %v903_v25 = vsel %vm895_vm11, %v881_v17, %v899_v20 }
 0x4d3   :  { %v886_v26 = vadd.f32 %v1182_v15, %v885_v24  ;;  %912 = vrot.lane.b32.xlu0 %v903_v25, %s1529_s21  ;;  %v902_v38 = vsel %vm894_vm12, %v876_v19, %v898_v21 }
 0x4d4   :  { %v901_v27 = vmul.f32 0.01, %v891_v23  ;;  %910 = vrot.lane.b32.xlu1 %v902_v38, %s1529_s21  ;;  %vm897_vm13 = vcmp.ge.f32.partialorder %v891_v23, 0.0 }
 0x4d5   :  { %v900_v28 = vmul.f32 0.01, %v886_v26  ;;  %vm896_vm14 = vcmp.ge.f32.partialorder %v886_v26, 0.0 }
 0x4d6   :  { %v905_v29 = vsel %vm897_vm13, %v891_v23, %v901_v27 }
 0x4d7   :  { %916 = vrot.lane.b32.xlu0 %v905_v29, %s1529_s21  ;;  %v904_v30 = vsel %vm896_vm14, %v886_v26, %v900_v28 }
 0x4d8   :  { %914 = vrot.lane.b32.xlu1 %v904_v30, %s1529_s21 }
 0x545   :  { %v913_v31 = vpop.permute.xlu0 %912 }
 0x546   :  { %v923_v32 = vadd.f32 %v1343_v60, %v913_v31  ;;  %v911_v33 = vpop.permute.xlu1 %910 }
 0x547   :  { %v922_v34 = vadd.f32 %v911_v33, %v740_v62 }
 0x548   :  { %932 = vrot.lane.b32.xlu0 %v923_v32, %s1526_s13 }
 0x549   :  { %v917_v35 = vpop.permute.xlu0 %916  ;;  %930 = vrot.lane.b32.xlu1 %v922_v34, %s1526_s13 }
 0x54a   :  { %v925_v36 = vadd.f32 %v1346_v4, %v917_v35  ;;  %v915_v37 = vpop.permute.xlu1 %914 }
 0x54b   :  { %v924_v39 = vadd.f32 %v915_v37, %v750_v6 }
 0x54c   :  { %936 = vrot.lane.b32.xlu0 %v925_v36, %s1526_s13 }
 0x54d   :  { %934 = vrot.lane.b32.xlu1 %v924_v39, %s1526_s13 }
 0x550   :  { %1522 = vrot.lane.b32.xlu0 %v1610_v13, %s1529_s21 }
 0x551   :  { %1517 = vrot.lane.b32.xlu1 %v1644_v41, %s1529_s21 }
 0x5ba   :  { %v933_v40 = vpop.permute.xlu0 %932 }
 0x5bb   :  { %1138 = vst.msk [vmem:[%s1795_s6 + $0x8] sm:$0xff] %vm46_vm0, %v933_v40  ;;  %v931_v42 = vpop.permute.xlu1 %930 }
 0x5bc   :  { %v1451_v43 = vpack.c.bf16 %v933_v40, %v931_v42  ;;  %1137 = vst.msk [vmem:[%s1795_s6] sm:$0xff] %vm46_vm0, %v931_v42 }
 0x5be   :  { %v937_v44 = vpop.permute.xlu0 %936  ;;  %1452 = vmatprep.subr.bf16.mxu1 %v1451_v43 }
 0x5bf   :  { %1140 = vst.msk [vmem:[%s1795_s6 + $0x18] sm:$0xff] %vm46_vm0, %v937_v44  ;;  %1454 = vmatpush3.bf16.msra.mxu1 %v1451_v43  ;;  %v935_v13 = vpop.permute.xlu1 %934 }
 0x5c0   :  { %v1455_v41 = vpack.c.bf16 %v937_v44, %v935_v13  ;;  %1139 = vst.msk [vmem:[%s1795_s6 + $0x10] sm:$0xff] %vm46_vm0, %v935_v13 }
 0x5c2   :  { %1456 = vmatprep.subr.bf16.mxu1 %v1455_v41  ;;  %v1523_v45 = vpop.permute.xlu0 %1522 }
 0x5c3   :  { %1458 = vmatpush3.bf16.msra.mxu1 %v1455_v41  ;;  %v1518_v46 = vpop.permute.xlu1 %1517  ;;  %v1525_v47 = vunpack.i.h.bf16 %v1523_v45  ;;  %v1524_v48 = vunpack.i.l.bf16 %v1523_v45 }
 0x5c4   :  { %v1520_v49 = vunpack.i.h.bf16 %v1518_v46  ;;  %v1519_v50 = vunpack.i.l.bf16 %v1518_v46 }
 0x5c5   :  { %v1463_v52 = vpack.c.bf16 %v1525_v47, %v1524_v48 }
 0x5c6   :  { %1370 = vmatmul.mubr.msk.f32.vlgmr.msra.gmra.mrb[12].mxu1 %vm46_vm0, %v1662_v54  ;;  %v1459_v51 = vpack.c.bf16 %v1520_v49, %v1519_v50  ;;  %v1191_v54 = vld [vmem:[%s1792_s5 + $0x6] ss:$0 sm:$0xff] }
 0x5c8   :  { %1460 = vmatprep.subr.bf16.mxu0 %v1459_v51 }
 0x5c9   :  { %1462 = vmatpush3.bf16.msra.mxu0 %v1459_v51 }
 0x5ca   :  { %1464 = vmatprep.subr.bf16.mxu0 %v1463_v52 }
 0x5cd   :  { %1466 = vmatpush3.bf16.msra.mxu0 %v1463_v52 }
 0x699   :  { %v1371_v53 = vpop.f32.mrb[12].mxu1 }
 0x69a   :  { %v1008_v55 = vpop.f32.mrb[13].mxu1 }
 0x69b   :  { %1380 = vmatprep.mubr.msk.f32.mxu0 %vm46_vm0, %v1008_v55 }
 0x69c   :  { %1381 = vmatmul.mubr.msk.f32.vlgmr.msra.gmra.mrb[10].mxu0 %vm46_vm0, %v1371_v53 }
 0x76f   :  { %v1382_v56 = vpop.f32.mrb[10].mxu0 }
 0x770   :  { %1114 = vrot.lane.b32.xlu0 %v1382_v56, %s1529_s21  ;;  %v1101_v57 = vpop.f32.mrb[11].mxu0 }
 0x771   :  { %1112 = vrot.lane.b32.xlu1 %v1101_v57, %s1529_s21 }
 0x775   :  { %1126 = vrot.lane.b32.xlu1 %v1191_v54, %s1529_s21 }
 0x7e2   :  { %v1115_v58 = vpop.permute.xlu0 %1114 }
 0x7e3   :  { %v1113_v59 = vpop.permute.xlu1 %1112  ;;  %v1119_v60 = vadd.f32 %v1671_v1, %v1115_v58 }
 0x7e4   :  { %v1118_v61 = vadd.f32 %v1113_v59, %v1674_v3 }
 0x7e7   :  { %v1127_v62 = vpop.permute.xlu1 %1126 }
 0x7e8   :  { %v1129_v63 = vadd.f32 %v1127_v62, %v1118_v61  ;;  %v1130_v0 = vadd.f32 %v1127_v62, %v1119_v60 }
 0x7ea   :  { %vm1132_vm15 = vcmp.ge.f32.partialorder %v1130_v0, 0.0  ;;  %v1134_v2 = vmul.f32 0.01, %v1130_v0  ;;  %vm1131_vm1 = vcmp.ge.f32.partialorder %v1129_v63, 0.0  ;;  %v1133_v4 = vmul.f32 0.01, %v1129_v63 }
 0x7ec   :  { %v1136_v5 = vsel %vm1132_vm15, %v1130_v0, %v1134_v2  ;;  %v1135_v6 = vsel %vm1131_vm1, %v1129_v63, %v1133_v4 }
 0x7ed   :  { %1145 = vrot.lane.b32.xlu1 %v1136_v5, %s1526_s13  ;;  %1143 = vrot.lane.b32.xlu0 %v1135_v6, %s1526_s13 }
 0x85f   :  { %v1146_v7 = vpop.permute.xlu1 %1145  ;;  %v1144_v8 = vpop.permute.xlu0 %1143 }
 0x860   :  { %1150 = vst.msk [vmem:[%s1796_s7 + $0x8] sm:$0xff] %vm46_vm0, %v1146_v7  ;;  %1149 = vst.msk [vmem:[%s1796_s7] sm:$0xff] %vm46_vm0, %v1144_v8 }

</bundles_post_ra>
